<compile_context>
chip_gen: v7x
topology: tpu7x:2x2x1
jax: 0.10.0
libtpu: 0.0.40
codegen_flags: <defaults>
</compile_context>

<pallas_src>
import functools
import math

import jax
import jax.numpy as jnp
from jax.experimental import pallas as pl
from jax.experimental.pallas import tpu as pltpu


def attention_pool_kernel(x_ref, pos0_ref, post_ref, wq_ref, bq_ref,
                          wkv_ref, bkv_ref, cw_ref, cb_ref,
                          headm_ref, headmT_ref, expm_ref, segT_ref,
                          o_ref, *, num_heads, hw):
    """One grid step = one batch tile (Bt elements), batch folded into lanes.

    x_ref:      (C, Bt*HW)   input; channels on sublanes, (batch, spatial) on lanes
    pos0_ref:   (C, 1)       positional embedding of the mean token (token 0)
    post_ref:   (C, Bt*HW)   spatial positional embedding tiled over the batch tile
    wq_ref:     (C, C)       query projection (rows 0:C of the qkv conv weight)
    bq_ref:     (C, 1)
    wkv_ref:    (2C, C)      key/value projection (rows C:3C of the qkv weight)
    bkv_ref:    (2C, 1)
    cw_ref:     (Dout, C)    output projection
    cb_ref:     (Dout, 1)
    headm_ref:  (H, C)       head-sum matrix: headm[h, h*ch + c] = 1
    headmT_ref: (C, H)       transpose (head -> channel broadcast)
    expm_ref:   (Bt, Bt*HW)  segment matrix: expm[b, b*HW + s] = 1
    segT_ref:   (Bt*HW, Bt)  transpose (segmented lane sums via the MXU)
    o_ref:      (Bt, Dout)   pooled output (token 0 only)
    """
    C = x_ref.shape[0]
    ch = C // num_heads
    scale2 = 1.0 / math.sqrt(ch)        # (1/ch**0.25)**2, applied once to q.k

    xb = x_ref[...]                      # [C, Bt*HW]
    expm = expm_ref[...]                 # [Bt, Bt*HW]
    segT = segT_ref[...]                 # [Bt*HW, Bt]
    headm = headm_ref[...]               # [H, C]
    headmT = headmT_ref[...]             # [C, H]

    # Token 0 = per-element spatial mean (+ its positional embedding);
    # spatial tokens get the tiled positional embedding. No lane concat.
    mean_b = jnp.dot(xb, segT, preferred_element_type=jnp.float32) * (1.0 / hw)  # [C, Bt]
    tok0 = mean_b + pos0_ref[...]                                                # [C, Bt]
    xs = xb + post_ref[...]                                                      # [C, Bt*HW]

    # Only the token-0 query is ever used; keys/values for all tokens.
    q0 = jnp.dot(wq_ref[...], tok0, preferred_element_type=jnp.float32) + bq_ref[...]     # [C, Bt]
    kv0 = jnp.dot(wkv_ref[...], tok0, preferred_element_type=jnp.float32) + bkv_ref[...]  # [2C, Bt]
    kvx = jnp.dot(wkv_ref[...], xs, preferred_element_type=jnp.float32) + bkv_ref[...]    # [2C, Bt*HW]
    k0, v0 = kv0[:C], kv0[C:]
    kx, vx = kvx[:C], kvx[C:]

    # Scores of the token-0 query against all keys, per head (VPU product +
    # MXU head-sum; no tiny per-head matmuls).
    q0e = jnp.dot(q0, expm, preferred_element_type=jnp.float32)                   # [C, Bt*HW]
    s0 = jnp.dot(headm, q0 * k0, preferred_element_type=jnp.float32) * scale2     # [H, Bt]
    sx = jnp.dot(headm, q0e * kx, preferred_element_type=jnp.float32) * scale2    # [H, Bt*HW]

    # Segmented softmax over {token0} ∪ {spatial tokens of the same element}.
    # Exact per-segment max (masked) keeps stability even if segments differ
    # wildly in score magnitude.
    seg_mask = expm > 0.0
    sx_m = jnp.where(seg_mask[None, :, :], sx[:, None, :], -jnp.inf)   # [H, Bt, Bt*HW]
    m = jnp.maximum(jnp.max(sx_m, axis=-1), s0)                        # [H, Bt]
    p0 = jnp.exp(s0 - m)                                               # [H, Bt]
    me = jnp.dot(m, expm, preferred_element_type=jnp.float32)          # [H, Bt*HW]
    px = jnp.exp(sx - me)                                              # [H, Bt*HW]
    denom = p0 + jnp.dot(px, segT, preferred_element_type=jnp.float32) # [H, Bt]

    # Attention-weighted values for token 0 only.
    p0c = jnp.dot(headmT, p0, preferred_element_type=jnp.float32)        # [C, Bt]
    pxc = jnp.dot(headmT, px, preferred_element_type=jnp.float32)        # [C, Bt*HW]
    denomc = jnp.dot(headmT, denom, preferred_element_type=jnp.float32)  # [C, Bt]
    numer = p0c * v0 + jnp.dot(pxc * vx, segT,
                               preferred_element_type=jnp.float32)       # [C, Bt]
    a0 = numer * pl.reciprocal(denomc, approx=False)                     # [C, Bt]

    # Output projection for token 0 only; store lane-dense [Bt, Dout].
    out = jnp.dot(cw_ref[...], a0, preferred_element_type=jnp.float32) + cb_ref[...]   # [Dout, Bt]
    o_ref[...] = jnp.transpose(out, (1, 0))


def attention_pool_2d(x, pos_emb, qkv_w, qkv_b, c_w, c_b, num_heads,
                      batch_tile=None):
    """x: [B, C, H, W] -> [B, Dout]  (matches AttentionPool2d.forward)."""
    B, C, H, W = x.shape
    HW = H * W
    Dout = c_w.shape[0]
    nh = num_heads
    ch = C // nh

    # Default: whole batch in one grid step (blocks then equal full array dims,
    # so no (8,128) alignment constraints). For grid > 1, pick batch_tile so
    # that batch_tile*HW % 128 == 0 and batch_tile % 8 == 0.
    Bt = batch_tile if batch_tile is not None else B
    Bp = ((B + Bt - 1) // Bt) * Bt

    xf = x.reshape(B, C, HW).astype(jnp.float32)
    if Bp != B:
        xf = jnp.pad(xf, ((0, Bp - B), (0, 0), (0, 0)))
    # Fold batch into the lane axis: [C, Bp*HW], lane index = b*HW + hw.
    x_cb = jnp.transpose(xf, (1, 0, 2)).reshape(C, Bp * HW)

    pos = pos_emb.astype(jnp.float32)
    pos0 = pos[:, 0:1]                               # [C, 1]
    pos_tiled = jnp.tile(pos[:, 1:], (1, Bt))        # [C, Bt*HW]

    qkv_wf = qkv_w.astype(jnp.float32)
    qkv_bf = qkv_b.astype(jnp.float32)
    w_q = qkv_wf[:C]                                 # [C, C]
    w_kv = qkv_wf[C:]                                # [2C, C]
    b_q = qkv_bf[:C].reshape(C, 1)
    b_kv = qkv_bf[C:].reshape(2 * C, 1)
    c_wf = c_w.astype(jnp.float32)
    c_b2 = c_b.astype(jnp.float32).reshape(Dout, 1)

    # Constant 0/1 helper matrices (grid-invariant, DMA'd once).
    headm = jnp.kron(jnp.eye(nh, dtype=jnp.float32),
                     jnp.ones((1, ch), jnp.float32))          # [H, C]
    headmT = headm.T                                          # [C, H]
    expm = jnp.kron(jnp.eye(Bt, dtype=jnp.float32),
                    jnp.ones((1, HW), jnp.float32))           # [Bt, Bt*HW]
    segT = expm.T                                             # [Bt*HW, Bt]

    kernel = functools.partial(attention_pool_kernel, num_heads=nh, hw=HW)

    out = pl.pallas_call(
        kernel,
        out_shape=jax.ShapeDtypeStruct((Bp, Dout), jnp.float32),
        grid=(Bp // Bt,),
        in_specs=[
            pl.BlockSpec((C, Bt * HW), lambda i: (0, i)),      # x (batch-tiled)
            pl.BlockSpec((C, 1), lambda i: (0, 0)),            # pos token 0
            pl.BlockSpec((C, Bt * HW), lambda i: (0, 0)),      # pos spatial (tiled)
            pl.BlockSpec((C, C), lambda i: (0, 0)),            # w_q
            pl.BlockSpec((C, 1), lambda i: (0, 0)),            # b_q
            pl.BlockSpec((2 * C, C), lambda i: (0, 0)),        # w_kv
            pl.BlockSpec((2 * C, 1), lambda i: (0, 0)),        # b_kv
            pl.BlockSpec((Dout, C), lambda i: (0, 0)),         # c_w
            pl.BlockSpec((Dout, 1), lambda i: (0, 0)),         # c_b
            pl.BlockSpec((nh, C), lambda i: (0, 0)),           # headm
            pl.BlockSpec((C, nh), lambda i: (0, 0)),           # headmT
            pl.BlockSpec((Bt, Bt * HW), lambda i: (0, 0)),     # expm
            pl.BlockSpec((Bt * HW, Bt), lambda i: (0, 0)),     # segT
        ],
        out_specs=pl.BlockSpec((Bt, Dout), lambda i: (i, 0)),
        compiler_params=pltpu.CompilerParams(
            dimension_semantics=("parallel",)),
    )(x_cb, pos0, pos_tiled, w_q, b_q, w_kv, b_kv, c_wf, c_b2,
      headm, headmT, expm, segT)

    return out[:B]                                            # [B, Dout]


def attention_pool_2d_ref(x, pos_emb, qkv_w, qkv_b, c_w, c_b, num_heads):
    """Plain-JAX reference mirroring the PyTorch forward exactly."""
    B, C, H, W = x.shape
    xf = x.reshape(B, C, H * W)
    xf = jnp.concatenate([xf.mean(axis=-1, keepdims=True), xf], axis=-1)
    xf = xf + pos_emb[None, :, :]
    qkv = jnp.einsum('oc,bct->bot', qkv_w, xf) + qkv_b[None, :, None]
    ch = C // num_heads
    q, k, v = jnp.split(qkv, 3, axis=1)
    T = xf.shape[-1]
    q = q.reshape(B * num_heads, ch, T)
    k = k.reshape(B * num_heads, ch, T)
    v = v.reshape(B * num_heads, ch, T)
    scale = 1.0 / math.sqrt(math.sqrt(ch))
    w = jnp.einsum('bct,bcs->bts', q * scale, k * scale)
    w = jax.nn.softmax(w.astype(jnp.float32), axis=-1)
    a = jnp.einsum('bts,bcs->bct', w, v).reshape(B, C, T)
    out = jnp.einsum('oc,bct->bot', c_w, a) + c_b[None, :, None]
    return out[:, :, 0]


if __name__ == "__main__":
    # Module hyper-parameters (small, consistent with AttentionPool2d.__init__)
    B = 2
    spacial_dim = 4          # input is [B, embed_dim, spacial_dim, spacial_dim]
    embed_dim = 32
    num_heads_channels = 8   # -> num_heads = 4, ch = 8
    output_dim = 16
    num_heads = embed_dim // num_heads_channels
    T = spacial_dim ** 2 + 1

    key = jax.random.PRNGKey(0)
    k_x, k_pos, k_qw, k_qb, k_cw, k_cb = jax.random.split(key, 6)

    x = jax.random.normal(k_x, (B, embed_dim, spacial_dim, spacial_dim),
                          dtype=jnp.float32)

    pos_emb = (jax.random.normal(k_pos, (embed_dim, T), dtype=jnp.float32)
               / embed_dim ** 0.5)
    bound_q = 1.0 / math.sqrt(embed_dim)
    qkv_w = jax.random.uniform(k_qw, (3 * embed_dim, embed_dim),
                               minval=-bound_q, maxval=bound_q,
                               dtype=jnp.float32)
    qkv_b = jax.random.uniform(k_qb, (3 * embed_dim,),
                               minval=-bound_q, maxval=bound_q,
                               dtype=jnp.float32)
    c_w = jax.random.uniform(k_cw, (output_dim, embed_dim),
                             minval=-bound_q, maxval=bound_q,
                             dtype=jnp.float32)
    c_b = jax.random.uniform(k_cb, (output_dim,),
                             minval=-bound_q, maxval=bound_q,
                             dtype=jnp.float32)

    out = attention_pool_2d(x, pos_emb, qkv_w, qkv_b, c_w, c_b, num_heads)
    out = jax.block_until_ready(out)

    ref = attention_pool_2d_ref(x, pos_emb, qkv_w, qkv_b, c_w, c_b, num_heads)
    assert out.shape == (B, output_dim)
    assert jnp.allclose(out, ref, atol=1e-4, rtol=1e-4)

    print("KERNEL_OK")
</pallas_src>

<mosaic_0001>
module attributes {stable_mosaic.version = 11 : i64} {
  func.func @attention_pool_kernel(%arg0: i32, %arg1: memref<32x32xf32, #tpu.memory_space<vmem>>, %arg2: memref<32x1xf32, #tpu.memory_space<vmem>>, %arg3: memref<32x32xf32, #tpu.memory_space<vmem>>, %arg4: memref<32x32xf32, #tpu.memory_space<vmem>>, %arg5: memref<32x1xf32, #tpu.memory_space<vmem>>, %arg6: memref<64x32xf32, #tpu.memory_space<vmem>>, %arg7: memref<64x1xf32, #tpu.memory_space<vmem>>, %arg8: memref<16x32xf32, #tpu.memory_space<vmem>>, %arg9: memref<16x1xf32, #tpu.memory_space<vmem>>, %arg10: memref<4x32xf32, #tpu.memory_space<vmem>>, %arg11: memref<32x4xf32, #tpu.memory_space<vmem>>, %arg12: memref<2x32xf32, #tpu.memory_space<vmem>>, %arg13: memref<32x2xf32, #tpu.memory_space<vmem>>, %arg14: memref<2x16xf32, #tpu.memory_space<vmem>>) attributes {dimension_semantics = [#tpu.dimension_semantics<parallel>], iteration_bounds = array<i64: 1>, scalar_prefetch = 0 : i64, scratch_operands = 0 : i64, tpu.core_type = #tpu.core_type<tc>, window_params = [{transform_indices = @transform_0, window_bounds = array<i64: 32, 32>}, {pipeline_mode = #tpu.pipeline_mode<synchronous>, transform_indices = @transform_1, window_bounds = array<i64: 32, 1>}, {pipeline_mode = #tpu.pipeline_mode<synchronous>, transform_indices = @transform_2, window_bounds = array<i64: 32, 32>}, {pipeline_mode = #tpu.pipeline_mode<synchronous>, transform_indices = @transform_3, window_bounds = array<i64: 32, 32>}, {pipeline_mode = #tpu.pipeline_mode<synchronous>, transform_indices = @transform_4, window_bounds = array<i64: 32, 1>}, {pipeline_mode = #tpu.pipeline_mode<synchronous>, transform_indices = @transform_5, window_bounds = array<i64: 64, 32>}, {pipeline_mode = #tpu.pipeline_mode<synchronous>, transform_indices = @transform_6, window_bounds = array<i64: 64, 1>}, {pipeline_mode = #tpu.pipeline_mode<synchronous>, transform_indices = @transform_7, window_bounds = array<i64: 16, 32>}, {pipeline_mode = #tpu.pipeline_mode<synchronous>, transform_indices = @transform_8, window_bounds = array<i64: 16, 1>}, {pipeline_mode = #tpu.pipeline_mode<synchronous>, transform_indices = @transform_9, window_bounds = array<i64: 4, 32>}, {pipeline_mode = #tpu.pipeline_mode<synchronous>, transform_indices = @transform_10, window_bounds = array<i64: 32, 4>}, {pipeline_mode = #tpu.pipeline_mode<synchronous>, transform_indices = @transform_11, window_bounds = array<i64: 2, 32>}, {pipeline_mode = #tpu.pipeline_mode<synchronous>, transform_indices = @transform_12, window_bounds = array<i64: 32, 2>}, {transform_indices = @transform_13, window_bounds = array<i64: 2, 16>}]} {
    %c0 = arith.constant 0 : index
    %c0_0 = arith.constant 0 : index
    %0 = vector.load %arg1[%c0, %c0_0] : memref<32x32xf32, #tpu.memory_space<vmem>>, vector<32x32xf32>
    %c0_1 = arith.constant 0 : index
    %c0_2 = arith.constant 0 : index
    %1 = vector.load %arg12[%c0_1, %c0_2] : memref<2x32xf32, #tpu.memory_space<vmem>>, vector<2x32xf32>
    %c0_3 = arith.constant 0 : index
    %c0_4 = arith.constant 0 : index
    %2 = vector.load %arg13[%c0_3, %c0_4] : memref<32x2xf32, #tpu.memory_space<vmem>>, vector<32x2xf32>
    %c0_5 = arith.constant 0 : index
    %c0_6 = arith.constant 0 : index
    %3 = vector.load %arg10[%c0_5, %c0_6] : memref<4x32xf32, #tpu.memory_space<vmem>>, vector<4x32xf32>
    %c0_7 = arith.constant 0 : index
    %c0_8 = arith.constant 0 : index
    %4 = vector.load %arg11[%c0_7, %c0_8] : memref<32x4xf32, #tpu.memory_space<vmem>>, vector<32x4xf32>
    %cst = arith.constant dense<0.000000e+00> : vector<32x2xf32>
    %5 = tpu.matmul %0, %2, %cst {dimension_numbers = #tpu.dot_dimension_numbers<[1], [0], [0], [1], [0, 0, 1, 1], [], []>} : vector<32x32xf32>, vector<32x2xf32>, vector<32x2xf32> -> vector<32x2xf32>
    %cst_9 = arith.constant 6.250000e-02 : f32
    %6 = vector.broadcast %cst_9 : f32 to vector<32x2xf32>
    %7 = arith.mulf %5, %6 : vector<32x2xf32>
    %c0_10 = arith.constant 0 : index
    %c0_11 = arith.constant 0 : index
    %8 = vector.load %arg2[%c0_10, %c0_11] : memref<32x1xf32, #tpu.memory_space<vmem>>, vector<32x1xf32>
    %9 = vector.broadcast %8 : vector<32x1xf32> to vector<32x2xf32>
    %10 = arith.addf %7, %9 : vector<32x2xf32>
    %c0_12 = arith.constant 0 : index
    %c0_13 = arith.constant 0 : index
    %11 = vector.load %arg3[%c0_12, %c0_13] : memref<32x32xf32, #tpu.memory_space<vmem>>, vector<32x32xf32>
    %12 = arith.addf %0, %11 : vector<32x32xf32>
    %c0_14 = arith.constant 0 : index
    %c0_15 = arith.constant 0 : index
    %13 = vector.load %arg4[%c0_14, %c0_15] : memref<32x32xf32, #tpu.memory_space<vmem>>, vector<32x32xf32>
    %cst_16 = arith.constant dense<0.000000e+00> : vector<32x2xf32>
    %14 = tpu.matmul %13, %10, %cst_16 {dimension_numbers = #tpu.dot_dimension_numbers<[1], [0], [0], [1], [0, 0, 1, 1], [], []>} : vector<32x32xf32>, vector<32x2xf32>, vector<32x2xf32> -> vector<32x2xf32>
    %c0_17 = arith.constant 0 : index
    %c0_18 = arith.constant 0 : index
    %15 = vector.load %arg5[%c0_17, %c0_18] : memref<32x1xf32, #tpu.memory_space<vmem>>, vector<32x1xf32>
    %16 = vector.broadcast %15 : vector<32x1xf32> to vector<32x2xf32>
    %17 = arith.addf %14, %16 : vector<32x2xf32>
    %c0_19 = arith.constant 0 : index
    %c0_20 = arith.constant 0 : index
    %18 = vector.load %arg6[%c0_19, %c0_20] : memref<64x32xf32, #tpu.memory_space<vmem>>, vector<64x32xf32>
    %cst_21 = arith.constant dense<0.000000e+00> : vector<64x2xf32>
    %19 = tpu.matmul %18, %10, %cst_21 {dimension_numbers = #tpu.dot_dimension_numbers<[1], [0], [0], [1], [0, 0, 1, 1], [], []>} : vector<64x32xf32>, vector<32x2xf32>, vector<64x2xf32> -> vector<64x2xf32>
    %c0_22 = arith.constant 0 : index
    %c0_23 = arith.constant 0 : index
    %20 = vector.load %arg7[%c0_22, %c0_23] : memref<64x1xf32, #tpu.memory_space<vmem>>, vector<64x1xf32>
    %21 = vector.broadcast %20 : vector<64x1xf32> to vector<64x2xf32>
    %22 = arith.addf %19, %21 : vector<64x2xf32>
    %c0_24 = arith.constant 0 : index
    %c0_25 = arith.constant 0 : index
    %23 = vector.load %arg6[%c0_24, %c0_25] : memref<64x32xf32, #tpu.memory_space<vmem>>, vector<64x32xf32>
    %cst_26 = arith.constant dense<0.000000e+00> : vector<64x32xf32>
    %24 = tpu.matmul %23, %12, %cst_26 {dimension_numbers = #tpu.dot_dimension_numbers<[1], [0], [0], [1], [0, 0, 1, 1], [], []>} : vector<64x32xf32>, vector<32x32xf32>, vector<64x32xf32> -> vector<64x32xf32>
    %c0_27 = arith.constant 0 : index
    %c0_28 = arith.constant 0 : index
    %25 = vector.load %arg7[%c0_27, %c0_28] : memref<64x1xf32, #tpu.memory_space<vmem>>, vector<64x1xf32>
    %26 = vector.broadcast %25 : vector<64x1xf32> to vector<64x32xf32>
    %27 = arith.addf %24, %26 : vector<64x32xf32>
    %28 = vector.extract_strided_slice %22 {offsets = [0, 0], sizes = [32, 2], strides = [1, 1]} : vector<64x2xf32> to vector<32x2xf32>
    %29 = vector.extract_strided_slice %22 {offsets = [32, 0], sizes = [32, 2], strides = [1, 1]} : vector<64x2xf32> to vector<32x2xf32>
    %30 = vector.extract_strided_slice %27 {offsets = [0, 0], sizes = [32, 32], strides = [1, 1]} : vector<64x32xf32> to vector<32x32xf32>
    %31 = vector.extract_strided_slice %27 {offsets = [32, 0], sizes = [32, 32], strides = [1, 1]} : vector<64x32xf32> to vector<32x32xf32>
    %cst_29 = arith.constant dense<0.000000e+00> : vector<32x32xf32>
    %32 = tpu.matmul %17, %1, %cst_29 {dimension_numbers = #tpu.dot_dimension_numbers<[1], [0], [0], [1], [0, 0, 1, 1], [], []>} : vector<32x2xf32>, vector<2x32xf32>, vector<32x32xf32> -> vector<32x32xf32>
    %33 = arith.mulf %17, %28 : vector<32x2xf32>
    %cst_30 = arith.constant dense<0.000000e+00> : vector<4x2xf32>
    %34 = tpu.matmul %3, %33, %cst_30 {dimension_numbers = #tpu.dot_dimension_numbers<[1], [0], [0], [1], [0, 0, 1, 1], [], []>} : vector<4x32xf32>, vector<32x2xf32>, vector<4x2xf32> -> vector<4x2xf32>
    %cst_31 = arith.constant 0.353553385 : f32
    %35 = vector.broadcast %cst_31 : f32 to vector<4x2xf32>
    %36 = arith.mulf %34, %35 : vector<4x2xf32>
    %37 = arith.mulf %32, %30 : vector<32x32xf32>
    %cst_32 = arith.constant dense<0.000000e+00> : vector<4x32xf32>
    %38 = tpu.matmul %3, %37, %cst_32 {dimension_numbers = #tpu.dot_dimension_numbers<[1], [0], [0], [1], [0, 0, 1, 1], [], []>} : vector<4x32xf32>, vector<32x32xf32>, vector<4x32xf32> -> vector<4x32xf32>
    %cst_33 = arith.constant 0.353553385 : f32
    %39 = vector.broadcast %cst_33 : f32 to vector<4x32xf32>
    %40 = arith.mulf %38, %39 : vector<4x32xf32>
    %cst_34 = arith.constant 0.000000e+00 : f32
    %41 = vector.broadcast %cst_34 : f32 to vector<2x32xf32>
    %42 = arith.cmpf ogt, %1, %41 : vector<2x32xf32>
    %43 = vector.shape_cast %42 : vector<2x32xi1> to vector<1x2x32xi1>
    %44 = vector.shape_cast %40 : vector<4x32xf32> to vector<4x1x32xf32>
    %cst_35 = arith.constant 0xFF800000 : f32
    %45 = vector.shape_cast %43 : vector<1x2x32xi1> to vector<1x2x32xi1>
    %46 = vector.broadcast %45 : vector<1x2x32xi1> to vector<4x2x32xi1>
    %47 = vector.shape_cast %44 : vector<4x1x32xf32> to vector<4x1x32xf32>
    %48 = vector.broadcast %47 : vector<4x1x32xf32> to vector<4x2x32xf32>
    %49 = vector.broadcast %cst_35 : f32 to vector<4x2x32xf32>
    %50 = arith.select %46, %48, %49 : vector<4x2x32xi1>, vector<4x2x32xf32>
    %cst_36 = arith.constant dense<0xFF800000> : vector<4x2xf32>
    %51 = vector.multi_reduction <maximumf>, %50, %cst_36 [2] : vector<4x2x32xf32> to vector<4x2xf32>
    %52 = arith.maximumf %51, %36 : vector<4x2xf32>
    %53 = arith.subf %36, %52 : vector<4x2xf32>
    %54 = math.exp %53 : vector<4x2xf32>
    %cst_37 = arith.constant dense<0.000000e+00> : vector<4x32xf32>
    %55 = tpu.matmul %52, %1, %cst_37 {dimension_numbers = #tpu.dot_dimension_numbers<[1], [0], [0], [1], [0, 0, 1, 1], [], []>} : vector<4x2xf32>, vector<2x32xf32>, vector<4x32xf32> -> vector<4x32xf32>
    %56 = arith.subf %40, %55 : vector<4x32xf32>
    %57 = math.exp %56 : vector<4x32xf32>
    %cst_38 = arith.constant dense<0.000000e+00> : vector<4x2xf32>
    %58 = tpu.matmul %57, %2, %cst_38 {dimension_numbers = #tpu.dot_dimension_numbers<[1], [0], [0], [1], [0, 0, 1, 1], [], []>} : vector<4x32xf32>, vector<32x2xf32>, vector<4x2xf32> -> vector<4x2xf32>
    %59 = arith.addf %54, %58 : vector<4x2xf32>
    %cst_39 = arith.constant dense<0.000000e+00> : vector<32x2xf32>
    %60 = tpu.matmul %4, %54, %cst_39 {dimension_numbers = #tpu.dot_dimension_numbers<[1], [0], [0], [1], [0, 0, 1, 1], [], []>} : vector<32x4xf32>, vector<4x2xf32>, vector<32x2xf32> -> vector<32x2xf32>
    %cst_40 = arith.constant dense<0.000000e+00> : vector<32x32xf32>
    %61 = tpu.matmul %4, %57, %cst_40 {dimension_numbers = #tpu.dot_dimension_numbers<[1], [0], [0], [1], [0, 0, 1, 1], [], []>} : vector<32x4xf32>, vector<4x32xf32>, vector<32x32xf32> -> vector<32x32xf32>
    %cst_41 = arith.constant dense<0.000000e+00> : vector<32x2xf32>
    %62 = tpu.matmul %4, %59, %cst_41 {dimension_numbers = #tpu.dot_dimension_numbers<[1], [0], [0], [1], [0, 0, 1, 1], [], []>} : vector<32x4xf32>, vector<4x2xf32>, vector<32x2xf32> -> vector<32x2xf32>
    %63 = arith.mulf %60, %29 : vector<32x2xf32>
    %64 = arith.mulf %61, %31 : vector<32x32xf32>
    %cst_42 = arith.constant dense<0.000000e+00> : vector<32x2xf32>
    %65 = tpu.matmul %64, %2, %cst_42 {dimension_numbers = #tpu.dot_dimension_numbers<[1], [0], [0], [1], [0, 0, 1, 1], [], []>} : vector<32x32xf32>, vector<32x2xf32>, vector<32x2xf32> -> vector<32x2xf32>
    %66 = arith.addf %63, %65 : vector<32x2xf32>
    %67 = tpu.reciprocal %62 : vector<32x2xf32> -> vector<32x2xf32>
    %68 = arith.mulf %66, %67 : vector<32x2xf32>
    %c0_43 = arith.constant 0 : index
    %c0_44 = arith.constant 0 : index
    %69 = vector.load %arg8[%c0_43, %c0_44] : memref<16x32xf32, #tpu.memory_space<vmem>>, vector<16x32xf32>
    %cst_45 = arith.constant dense<0.000000e+00> : vector<16x2xf32>
    %70 = tpu.matmul %69, %68, %cst_45 {dimension_numbers = #tpu.dot_dimension_numbers<[1], [0], [0], [1], [0, 0, 1, 1], [], []>} : vector<16x32xf32>, vector<32x2xf32>, vector<16x2xf32> -> vector<16x2xf32>
    %c0_46 = arith.constant 0 : index
    %c0_47 = arith.constant 0 : index
    %71 = vector.load %arg9[%c0_46, %c0_47] : memref<16x1xf32, #tpu.memory_space<vmem>>, vector<16x1xf32>
    %72 = vector.broadcast %71 : vector<16x1xf32> to vector<16x2xf32>
    %73 = arith.addf %70, %72 : vector<16x2xf32>
    %74 = tpu.transpose %73, [1, 0] : vector<16x2xf32> -> vector<2x16xf32>
    %c0_48 = arith.constant 0 : index
    %c0_49 = arith.constant 0 : index
    %75 = vector.load %arg14[%c0_48, %c0_49] : memref<2x16xf32, #tpu.memory_space<vmem>>, vector<2x16xf32>
    tpu.vector_store %arg14[%c0_48, %c0_49], %74 {strides = array<i32>} : memref<2x16xf32, #tpu.memory_space<vmem>>, vector<2x16xf32>,
    return
  }
  func.func @transform_0(%arg0: i32) -> (i32, i32) {
    %c0_i32 = arith.constant 0 : i32
    %c0_i32_0 = arith.constant 0 : i32
    return %c0_i32, %arg0 : i32, i32
  }
  func.func @transform_1(%arg0: i32) -> (i32, i32) {
    %c0_i32 = arith.constant 0 : i32
    %c0_i32_0 = arith.constant 0 : i32
    %c0_i32_1 = arith.constant 0 : i32
    return %c0_i32, %c0_i32_0 : i32, i32
  }
  func.func @transform_2(%arg0: i32) -> (i32, i32) {
    %c0_i32 = arith.constant 0 : i32
    %c0_i32_0 = arith.constant 0 : i32
    %c0_i32_1 = arith.constant 0 : i32
    return %c0_i32, %c0_i32_0 : i32, i32
  }
  func.func @transform_3(%arg0: i32) -> (i32, i32) {
    %c0_i32 = arith.constant 0 : i32
    %c0_i32_0 = arith.constant 0 : i32
    %c0_i32_1 = arith.constant 0 : i32
    return %c0_i32, %c0_i32_0 : i32, i32
  }
  func.func @transform_4(%arg0: i32) -> (i32, i32) {
    %c0_i32 = arith.constant 0 : i32
    %c0_i32_0 = arith.constant 0 : i32
    %c0_i32_1 = arith.constant 0 : i32
    return %c0_i32, %c0_i32_0 : i32, i32
  }
  func.func @transform_5(%arg0: i32) -> (i32, i32) {
    %c0_i32 = arith.constant 0 : i32
    %c0_i32_0 = arith.constant 0 : i32
    %c0_i32_1 = arith.constant 0 : i32
    return %c0_i32, %c0_i32_0 : i32, i32
  }
  func.func @transform_6(%arg0: i32) -> (i32, i32) {
    %c0_i32 = arith.constant 0 : i32
    %c0_i32_0 = arith.constant 0 : i32
    %c0_i32_1 = arith.constant 0 : i32
    return %c0_i32, %c0_i32_0 : i32, i32
  }
  func.func @transform_7(%arg0: i32) -> (i32, i32) {
    %c0_i32 = arith.constant 0 : i32
    %c0_i32_0 = arith.constant 0 : i32
    %c0_i32_1 = arith.constant 0 : i32
    return %c0_i32, %c0_i32_0 : i32, i32
  }
  func.func @transform_8(%arg0: i32) -> (i32, i32) {
    %c0_i32 = arith.constant 0 : i32
    %c0_i32_0 = arith.constant 0 : i32
    %c0_i32_1 = arith.constant 0 : i32
    return %c0_i32, %c0_i32_0 : i32, i32
  }
  func.func @transform_9(%arg0: i32) -> (i32, i32) {
    %c0_i32 = arith.constant 0 : i32
    %c0_i32_0 = arith.constant 0 : i32
    %c0_i32_1 = arith.constant 0 : i32
    return %c0_i32, %c0_i32_0 : i32, i32
  }
  func.func @transform_10(%arg0: i32) -> (i32, i32) {
    %c0_i32 = arith.constant 0 : i32
    %c0_i32_0 = arith.constant 0 : i32
    %c0_i32_1 = arith.constant 0 : i32
    return %c0_i32, %c0_i32_0 : i32, i32
  }
  func.func @transform_11(%arg0: i32) -> (i32, i32) {
    %c0_i32 = arith.constant 0 : i32
    %c0_i32_0 = arith.constant 0 : i32
    %c0_i32_1 = arith.constant 0 : i32
    return %c0_i32, %c0_i32_0 : i32, i32
  }
  func.func @transform_12(%arg0: i32) -> (i32, i32) {
    %c0_i32 = arith.constant 0 : i32
    %c0_i32_0 = arith.constant 0 : i32
    %c0_i32_1 = arith.constant 0 : i32
    return %c0_i32, %c0_i32_0 : i32, i32
  }
  func.func @transform_13(%arg0: i32) -> (i32, i32) {
    %c0_i32 = arith.constant 0 : i32
    %c0_i32_0 = arith.constant 0 : i32
    return %arg0, %c0_i32 : i32, i32
  }
}

</mosaic_0001>

<bundles_post_ra>
// kernel: tpu_custom_call.1
= control target key start
LH: loop header
LB: loop body
LE: loop exit
PB: predicated region body
PF: predicated region fallthrough
CT: control target
= control target key end

     0   :  { %vm59_vm0 = vcmask 261120   ;;  %v2118_v6 = vmov 0   ;;  %s2519_s0 = inlined_call_operand.vmem [shape: f32[32,32], index: 0, kind: input, shape index: {}]   ;;  %s2520_s1 = inlined_call_operand.vmem [shape: f32[32,1], index: 1, kind: input, shape index: {}]   ;;  %s2521_s2 = inlined_call_operand.vmem [shape: f32[32,32], index: 2, kind: input, shape index: {}]   ;;  %s2522_s3 = inlined_call_operand.vmem [shape: f32[32,32], index: 3, kind: input, shape index: {}]   ;;  %s2523_s4 = inlined_call_operand.vmem [shape: f32[32,1], index: 4, kind: input, shape index: {}]   ;;  %s2524_s5 = inlined_call_operand.vmem [shape: f32[64,32], index: 5, kind: input, shape index: {}]   ;;  %s2525_s6 = inlined_call_operand.vmem [shape: f32[64,1], index: 6, kind: input, shape index: {}]   ;;  %s2526_s7 = inlined_call_operand.vmem [shape: f32[16,32], index: 7, kind: input, shape index: {}]   ;;  %s2527_s8 = inlined_call_operand.vmem [shape: f32[16,1], index: 8, kind: input, shape index: {}]   ;;  %s2528_s9 = inlined_call_operand.vmem [shape: f32[4,32], index: 9, kind: input, shape index: {}]   ;;  %s2529_s10 = inlined_call_operand.vmem [shape: f32[32,4], index: 10, kind: input, shape index: {}]   ;;  %s2530_s11 = inlined_call_operand.vmem [shape: f32[2,32], index: 11, kind: input, shape index: {}]   ;;  %s2531_s12 = inlined_call_operand.vmem [shape: f32[32,2], index: 12, kind: input, shape index: {}]   ;;  %s2532_s13 = inlined_call_operand.hbm [shape: f32[2,16], index: 13, kind: output, shape index: {}]  }
   0x1   :  { %v50_v0 = vld [vmem:[%s2531_s12] sm:$0xff]  ;;  %v51_v1 = vld [vmem:[%s2531_s12 + $0x8] sm:$0xff]  ;;  %v52_v2 = vld [vmem:[%s2531_s12 + $0x10] sm:$0xff]  ;;  %2080 = vset.pattern.permute.xlu0 %v2118_v6  ;;  %2081 = vset.pattern.permute.xlu1 %v2118_v6 }
   0x2   :  { %v2203_v3 = vpack.c.bf16 %v51_v1, %v50_v0  ;;  %v53_v4 = vld [vmem:[%s2531_s12 + $0x18] sm:$0xff]  ;;  %v45_v5 = vld [vmem:[%s2519_s0] sm:$0xff]  ;;  %v46_v8 = vld [vmem:[%s2519_s0 + $0x8] sm:$0xff] }
   0x3   :  { %v2211_v7 = vpack.c.bf16 %v53_v4, %v52_v2  ;;  %1853 = vmatprep.mubr.msk.f32.mxu0 %vm59_vm0, %v45_v5  ;;  %v189_v9 = vld [vmem:[%s2521_s2] sm:$0xff]  ;;  %v190_v10 = vld [vmem:[%s2521_s2 + $0x8] sm:$0xff]  ;;  %v163_v14 = vld [vmem:[%s2520_s1 + $0x10] sm:$0xff] }
   0x4   :  { %2009 = vmatprep.subr.bf16.mxu0 %v2203_v3  ;;  %v193_v11 = vadd.f32 %v189_v9, %v45_v5  ;;  %v194_v12 = vadd.f32 %v190_v10, %v46_v8  ;;  %v161_v13 = vld [vmem:[%s2520_s1] sm:$0xff]  ;;  %177 = vperm.xlu1 %2081, %v163_v14   ;;  %v162_v16 = vld [vmem:[%s2520_s1 + $0x8] sm:$0xff]  ;;  %v164_v17 = vld [vmem:[%s2520_s1 + $0x18] sm:$0xff] }
   0x5   :  { %2011 = vmatpush3.bf16.msra.mxu0 %v2203_v3  ;;  %167 = vperm.xlu0 %2080, %v161_v13  }
   0x6   :  { %2013 = vmatprep.subr.bf16.mxu0 %v2211_v7  ;;  %v2232_v15 = vpack.c.bf16 %v194_v12, %v193_v11 }
   0x9   :  { %2015 = vmatpush3.bf16.msra.mxu0 %v2211_v7 }
   0xa   :  { %18 = vsyncpa [#allocation3], 0  ;;  %v47_v18 = vld [vmem:[%s2519_s0 + $0x10] sm:$0xff]  ;;  %172 = vperm.xlu0 %2080, %v162_v16   ;;  %182 = vperm.xlu1 %2081, %v164_v17   ;;  %v201_v19 = vld [vmem:[%s2523_s4] sm:$0xff]  ;;  %vm625_vm1 = vcmask 1041408   ;;  %v2119_v0 = vmov 0.0|0.0  }
   0xb   :  { %v202_v20 = vld [vmem:[%s2523_s4 + $0x8] sm:$0xff]  ;;  %v48_v21 = vld [vmem:[%s2519_s0 + $0x18] sm:$0xff]  ;;  %v203_v22 = vld [vmem:[%s2523_s4 + $0x10] sm:$0xff]  ;;  %vm2120_vm2 = vmmov 0   ;;  %v2121_v1 = vmov 0.0   ;;  %vm612_vm3 = vcmask 15360  }
   0xc   :  { %1854 = vmatmul.mubr.msk.f32.vlgmr.msra.gmra.mrb[0].mxu0 %vm59_vm0, %v46_v8  ;;  %v204_v23 = vld [vmem:[%s2523_s4 + $0x18] sm:$0xff]  ;;  %v330_v24 = vld [vmem:[%s2525_s6] sm:$0xff]  ;;  %v331_v25 = vld [vmem:[%s2525_s6 + $0x8] sm:$0xff]  ;;  %vm919_vm5 = vcmask 254976   ;;  %vm1162_vm6 = vcmask 31744   ;;  %vm1003_vm7 = vcmask 1041409  }
   0xd   :  { %1856 = vmatprep.mubr.msk.f32.mxu0 %vm59_vm0, %v47_v18  ;;  %v332_v26 = vld [vmem:[%s2525_s6 + $0x10] sm:$0xff]  ;;  %v333_v27 = vld [vmem:[%s2525_s6 + $0x18] sm:$0xff]  ;;  %v197_v30 = vld [vmem:[%s2522_s3] sm:$0xff]  ;;  %vm1005_vm8 = vcmask 1042434   ;;  %vm1007_vm9 = vcmask 1043459   ;;  %vm1175_vm10 = vcmask 1043456  }
   0xe   :  { %207 = vperm.xlu0 %2080, %v201_v19   ;;  %212 = vperm.xlu1 %2081, %v202_v20   ;;  %v191_v28 = vld [vmem:[%s2521_s2 + $0x10] sm:$0xff]  ;;  %v192_v29 = vld [vmem:[%s2521_s2 + $0x18] sm:$0xff]  ;;  %v322_v31 = vld [vmem:[%s2524_s5] sm:$0xff]  ;;  %s2123_s16 = smov [#allocation2]   ;;  %vm1683_vm11 = vcmask 123904  }
   0xf   :  { %v195_v32 = vadd.f32 %v191_v28, %v47_v18  ;;  %v196_v33 = vadd.f32 %v192_v29, %v48_v21  ;;  %1867 = vmatprep.mubr.msk.f32.mxu1 %vm59_vm0, %v197_v30  ;;  %v2291_v53 = vld [vmem:[%s2530_s11] sm:$0x3]  ;;  %v198_v54 = vld [vmem:[%s2522_s3 + $0x8] sm:$0xff]  ;;  %v199_v56 = vld [vmem:[%s2522_s3 + $0x10] sm:$0xff]  ;;  %s1691_s17 = sshll.u32 %s2123_s16, 4  ;;  %s1692_s17 = int_to_ptr.vmem [resolvable:$true] %s1691_s17 }
  0x10   :  { %1857 = vmatmul.mubr.msk.f32.gmra.mrb[2].mxu0 %vm59_vm0, %v48_v21  ;;  %v323_v55 = vld [vmem:[%s2524_s5 + $0x8] sm:$0xff]  ;;  %v324_v57 = vld [vmem:[%s2524_s5 + $0x10] sm:$0xff]  ;;  %v200_v58 = vld [vmem:[%s2522_s3 + $0x18] sm:$0xff]  ;;  %vm867_vm4 = vcmp.gt.f32.partialorder %v2291_v53, 0.0  ;;  %s2094_s18 = scalar_lea.vmem %s1692_s17, 32  ;;  %p2099_p1 = scmp.lt.s32.totalorder %s1692_s17, %s1692_s17 }
  0x11   :  { %1881 = vmatprep.mubr.msk.f32.mxu0 %vm59_vm0, %v322_v31  ;;  %v2036_v34 = vpack.c.bf16 %v196_v33, %v195_v32  ;;  %v325_v59 = vld [vmem:[%s2524_s5 + $0x18] sm:$0xff]  ;;  %v326_v60 = vld [vmem:[%s2524_s5 + $0x20] sm:$0xff]  ;;  %v327_v61 = vld [vmem:[%s2524_s5 + $0x28] sm:$0xff]  ;;  %p2095_p0 = scmp.ne.s32.totalorder %s1692_s17, %s2094_s18  ;;  %p2100_p2 = scmp.lt.s32.totalorder %s2094_s18, %s2094_s18 }
  0x12   :  { %217 = vperm.xlu0 %2080, %v203_v22   ;;  %222 = vperm.xlu1 %2081, %v204_v23   ;;  %v328_v62 = vld [vmem:[%s2524_s5 + $0x30] sm:$0xff]  ;;  %v329_v63 = vld [vmem:[%s2524_s5 + $0x38] sm:$0xff] }
  0x13   :  { %p2101_p3 = por %p2100_p2, %p2099_p1 }
  0x15   :  { %p2102_p4 = pnand %p2101_p3, %p2095_p0 }
  0x16   :  { %340 = vperm.xlu0 %2080, %v330_v24   ;;  %345 = vperm.xlu1 %2081, %v331_v25  }
  0x1a   :  { %350 = vperm.xlu0 %2080, %v332_v26   ;;  %355 = vperm.xlu1 %2081, %v333_v27  }
  0x83   :  { %v178_v36 = vpop.permute.xlu1 %177 }
  0x84   :  { %v168_v35 = vpop.permute.xlu0 %167 }
  0x89   :  { %v173_v40 = vpop.permute.xlu0 %172  ;;  %v183_v47 = vpop.permute.xlu1 %182 }
  0x8d   :  { %v208_v2 = vpop.permute.xlu0 %207  ;;  %v213_v4 = vpop.permute.xlu1 %212 }
  0x91   :  { %v218_v5 = vpop.permute.xlu0 %217  ;;  %v223_v6 = vpop.permute.xlu1 %222 }
  0x95   :  { %v341_v8 = vpop.permute.xlu0 %340  ;;  %v346_v9 = vpop.permute.xlu1 %345 }
  0x99   :  { %v351_v18 = vpop.permute.xlu0 %350  ;;  %v356_v19 = vpop.permute.xlu1 %355 }
  0xdf   :  { %v1855_v37 = vpop.f32.mrb[0].mxu0 }
  0xe0   :  { %v158_v38 = vmul.f32 0.0625, %v1855_v37  ;;  %v138_v39 = vpop.f32.mrb[1].mxu0 }
  0xe1   :  { %v157_v41 = vmul.f32 0.0625, %v138_v39  ;;  %v54_v39 = vld [vmem:[%s2528_s9] sm:$0xf] }
  0xe2   :  { %v186_v42 = vadd.f32 %v173_v40, %v158_v38 }
  0xe3   :  { %v185_v43 = vadd.f32 %v168_v35, %v157_v41  ;;  %v1858_v44 = vpop.f32.mrb[2].mxu0 }
  0xe4   :  { %v160_v45 = vmul.f32 0.0625, %v1858_v44  ;;  %v148_v46 = vpop.f32.mrb[3].mxu0 }
  0xe5   :  { %v2016_v48 = vpack.c.bf16 %v186_v42, %v185_v43  ;;  %v159_v49 = vmul.f32 0.0625, %v148_v46 }
  0xe6   :  { %v188_v50 = vadd.f32 %v183_v47, %v160_v45 }
  0xe7   :  { %v187_v51 = vadd.f32 %v178_v36, %v159_v49  ;;  %2017 = vmatprep.subr.bf16.mxu1 %v2016_v48  ;;  %2025 = vmatprep.subr.bf16.mxu0 %v2016_v48 }
  0xe8   :  { %2019 = vmatpush3.bf16.msra.mxu1 %v2016_v48  ;;  %2027 = vmatpush3.bf16.msra.mxu0 %v2016_v48 }
  0xe9   :  { %v2020_v52 = vpack.c.bf16 %v188_v50, %v187_v51 }
  0xeb   :  { %2021 = vmatprep.subr.bf16.mxu1 %v2020_v52  ;;  %2029 = vmatprep.subr.bf16.mxu0 %v2020_v52 }
  0xec   :  { %2023 = vmatpush3.bf16.msra.mxu1 %v2020_v52  ;;  %2031 = vmatpush3.bf16.msra.mxu0 %v2020_v52  ;;  %v872_v52 = vlaneseq }
  0xed   :  { %2033 = vmatprep.subr.bf16.mxu1 %v2232_v15  ;;  %1913 = vmatprep.subr.msk.mxu0 %vm625_vm1, %v2291_v53 }
  0xef   :  { %1868 = vmatmul.mubr.msk.f32.vlgmr.msra.gmra.mrb[0].mxu1 %vm59_vm0, %v198_v54  ;;  %1882 = vmatmul.mubr.msk.f32.vlgmr.msra.gmra.mrb[4].mxu0 %vm59_vm0, %v323_v55 }
  0xf0   :  { %2035 = vmatpush3.bf16.msra.mxu1 %v2232_v15  ;;  %1870 = vmatprep.mubr.msk.f32.mxu1 %vm59_vm0, %v199_v56 }
  0xf1   :  { %1884 = vmatprep.mubr.msk.f32.mxu0 %vm59_vm0, %v324_v57  ;;  %2037 = vmatprep.subr.bf16.mxu1 %v2036_v34 }
  0xf2   :  { %1914 = vmatpush3.msk.msra.mxu0 %vm625_vm1, %v2291_v53 }
  0xf3   :  { %1871 = vmatmul.mubr.msk.f32.gmra.mrb[2].mxu1 %vm59_vm0, %v200_v58  ;;  %1885 = vmatmul.mubr.msk.f32.gmra.mrb[6].mxu0 %vm59_vm0, %v325_v59 }
  0xf4   :  { %2039 = vmatpush3.bf16.msra.mxu1 %v2036_v34  ;;  %1901 = vmatprep.mubr.msk.f32.mxu1 %vm59_vm0, %v322_v31 }
  0xf5   :  { %1887 = vmatprep.mubr.msk.f32.mxu0 %vm59_vm0, %v326_v60  ;;  %2040 = vmatprep.subr.bf16.mxu1 %v2119_v0 }
  0xf6   :  { %2046 = vmatprep.subr.bf16.mxu0 %v2119_v0 }
  0xf7   :  { %1902 = vmatmul.mubr.msk.f32.vlgmr.msra.gmra.mrb[4].mxu1 %vm59_vm0, %v323_v55  ;;  %1888 = vmatmul.mubr.msk.f32.gmra.mrb[8].mxu0 %vm59_vm0, %v327_v61 }
  0xf8   :  { %1904 = vmatprep.mubr.msk.f32.mxu1 %vm59_vm0, %v324_v57  ;;  %1890 = vmatprep.mubr.msk.f32.mxu0 %vm59_vm0, %v328_v62 }
  0xfb   :  { %1905 = vmatmul.mubr.msk.f32.gmra.mrb[6].mxu1 %vm59_vm0, %v325_v59  ;;  %1891 = vmatmul.mubr.msk.f32.gmra.mrb[10].mxu0 %vm59_vm0, %v329_v63 }
  0xfc   :  { %1907 = vmatprep.mubr.msk.f32.mxu1 %vm59_vm0, %v326_v60 }
  0xff   :  { %1908 = vmatmul.mubr.msk.f32.gmra.mrb[8].mxu1 %vm59_vm0, %v327_v61  ;;  %v2385_v61 = vshrl.u32 %v872_v52, 7 }
 0x100   :  { %1910 = vmatprep.mubr.msk.f32.mxu1 %vm59_vm0, %v328_v62 }
 0x103   :  { %1911 = vmatmul.mubr.msk.f32.gmra.mrb[10].mxu1 %vm59_vm0, %v329_v63 }
 0x104   :  { %1929 = vmatprep.mubr.msk.f32.mxu1 %vm2120_vm2, %v2121_v1 }
 0x1c2   :  { %v1869_v10 = vpop.f32.mrb[0].mxu1  ;;  %v1883_v11 = vpop.f32.mrb[4].mxu0 }
 0x1c3   :  { %v309_v12 = vadd.f32 %v1869_v10, %v213_v4  ;;  %v474_v13 = vadd.f32 %v1883_v11, %v346_v9  ;;  %v303_v14 = vpop.f32.mrb[1].mxu1  ;;  %v468_v15 = vpop.f32.mrb[5].mxu0 }
 0x1c4   :  { %v304_v16 = vadd.f32 %v303_v14, %v208_v2  ;;  %v469_v17 = vadd.f32 %v468_v15, %v341_v8  ;;  %v897_v2 = vsub.s32 0, %v2385_v61 }
 0x1c5   :  { %v715_v20 = vmul.f32 %v474_v13, %v309_v12 }
 0x1c6   :  { %v714_v21 = vmul.f32 %v469_v17, %v304_v16  ;;  %v1872_v22 = vpop.f32.mrb[2].mxu1  ;;  %v1886_v23 = vpop.f32.mrb[6].mxu0  ;;  %1915 = vmatprep.mubr.msk.f32.mxu0 %vm612_vm3, %v304_v16 }
 0x1c7   :  { %v319_v24 = vadd.f32 %v1872_v22, %v223_v6  ;;  %v484_v25 = vadd.f32 %v1886_v23, %v356_v19  ;;  %v313_v26 = vpop.f32.mrb[3].mxu1  ;;  %v478_v27 = vpop.f32.mrb[7].mxu0  ;;  %1916 = vmatmul.mubr.msk.f32.vlgmr.msra.gmra.mrb[12].mxu0 %vm612_vm3, %v309_v12 }
 0x1c8   :  { %v2041_v28 = vpack.c.bf16 %v715_v20, %v714_v21  ;;  %v314_v29 = vadd.f32 %v313_v26, %v218_v5  ;;  %v479_v30 = vadd.f32 %v478_v27, %v351_v18 }
 0x1c9   :  { %v717_v31 = vmul.f32 %v484_v25, %v319_v24 }
 0x1ca   :  { %v716_v32 = vmul.f32 %v479_v30, %v314_v29  ;;  %v1903_v33 = vpop.f32.mrb[4].mxu1  ;;  %1918 = vmatprep.mubr.msk.f32.mxu0 %vm612_vm3, %v314_v29  ;;  %2042 = vmatpush3.bf16.msra.mxu1 %v2041_v28  ;;  %v2354_v34 = vpop.f32.mrb[8].mxu0 }
 0x1cb   :  { %v573_v35 = vpop.f32.mrb[5].mxu1  ;;  %1919 = vmatmul.mubr.msk.f32.gmra.mrb[14].mxu0 %vm612_vm3, %v319_v24  ;;  %2043 = vmatprep.subr.bf16.mxu1 %v2119_v0  ;;  %v2358_v36 = vpop.f32.mrb[9].mxu0  ;;  %v579_v47 = vadd.f32 %v1903_v33, %v346_v9  ;;  %v2122_v9 = vmov 1966171168  }
 0x1cc   :  { %v2044_v37 = vpack.c.bf16 %v717_v31, %v716_v32  ;;  %1940 = vmatprep.mubr.msk.f32.mxu0 %vm2120_vm2, %v2121_v1  ;;  %v574_v48 = vadd.f32 %v573_v35, %v341_v8  ;;  %v870_v10 = vunpack.c.l.s4 %v2122_v9  ;;  %v949_v35 = vsub.s32 2, %v2385_v61  ;;  %v55_v9 = vld [vmem:[%s2529_s10] sm:$0xff] }
 0x1ce   :  { %v1906_v38 = vpop.f32.mrb[6].mxu1  ;;  %2045 = vmatpush3.bf16.msra.mxu1 %v2044_v37  ;;  %v2372_v41 = vpop.f32.mrb[10].mxu0  ;;  %v871_v11 = vunpack.c.0.s8 %v870_v10 }
 0x1cf   :  { %v583_v40 = vpop.f32.mrb[7].mxu1  ;;  %1943 = vmatprep.subr.mxu1 %v2121_v1  ;;  %v2374_v42 = vpop.f32.mrb[11].mxu0  ;;  %v589_v55 = vadd.f32 %v1906_v38, %v356_v19  ;;  %v956_v38 = vsub.s32 3, %v2385_v61 }
 0x1d0   :  { %v584_v56 = vadd.f32 %v583_v40, %v351_v18  ;;  %v874_v12 = vsub.s32 %v871_v11, %v2385_v61  ;;  %v942_v40 = vsub.s32 1, %v2385_v61  ;;  %v986_v11 = vand.u32 127, %v872_v52 }
 0x1d1   :  { %1930 = vmatmul.mubr.msk.f32.vlgmr.msra.gmra.mrb[12].mxu1 %vm59_vm0, %v54_v39 }
 0x1d2   :  { %1944 = vmatpush3.msk.msra.mxu1 %vm625_vm1, %v2291_v53  ;;  %1945 = vmatprep.mubr.msk.f32.mxu1 %vm2120_vm2, %v2121_v1  ;;  %v2376_v43 = vpop.f32.mrb[8].mxu1 }
 0x1d3   :  { %2052 = vmatprep.subr.bf16.mxu1 %v2119_v0  ;;  %v2378_v44 = vpop.f32.mrb[9].mxu1 }
 0x1d6   :  { %v2380_v45 = vpop.f32.mrb[10].mxu1 }
 0x1d7   :  { %v2382_v46 = vpop.f32.mrb[11].mxu1 }
 0x29a   :  { %v1917_v49 = vpop.f32.mrb[12].mxu0 }
 0x29b   :  { %v793_v50 = vmul.f32 %v1917_v49, %v579_v47  ;;  %v695_v51 = vpop.f32.mrb[13].mxu0 }
 0x29c   :  { %v792_v54 = vmul.f32 %v695_v51, %v574_v48 }
 0x29e   :  { %v2047_v57 = vpack.c.bf16 %v793_v50, %v792_v54  ;;  %v1920_v58 = vpop.f32.mrb[14].mxu0 }
 0x29f   :  { %v795_v59 = vmul.f32 %v1920_v58, %v589_v55  ;;  %v705_v60 = vpop.f32.mrb[15].mxu0 }
 0x2a0   :  { %v794_v62 = vmul.f32 %v705_v60, %v584_v56  ;;  %2048 = vmatpush3.bf16.msra.mxu0 %v2047_v57  ;;  %v334_v57 = vld [vmem:[%s2525_s6 + $0x20] sm:$0xff] }
 0x2a1   :  { %2049 = vmatprep.subr.bf16.mxu0 %v2119_v0 }
 0x2a2   :  { %v2050_v63 = vpack.c.bf16 %v795_v59, %v794_v62  ;;  %v336_v62 = vld [vmem:[%s2525_s6 + $0x30] sm:$0xff] }
 0x2a4   :  { %2051 = vmatpush3.bf16.msra.mxu0 %v2050_v63  ;;  %v787_v4 = vpop.f32.mrb[12].mxu1 }
 0x2a5   :  { %v2389_v5 = vmul.f32 0.35355338, %v787_v4  ;;  %v1931_v6 = vpop.f32.mrb[13].mxu1  ;;  %v335_v4 = vld [vmem:[%s2525_s6 + $0x28] sm:$0xff] }
 0x2a6   :  { %v337_v6 = vld [vmem:[%s2525_s6 + $0x38] sm:$0xff] }
 0x2a7   :  { %1941 = vmatmul.mubr.msk.f32.vlgmr.msra.gmra.mrb[16].mxu0 %vm59_vm0, %v54_v39  ;;  %v936_v8 = vrot.slane %v2389_v5, %v897_v2  ;;  %v950_v37 = vrot.slane %v2389_v5, %v949_v35  ;;  %v957_v39 = vrot.slane %v2389_v5, %v956_v38  ;;  %v943_v47 = vrot.slane %v2389_v5, %v942_v40 }
 0x2a8   :  { %1961 = vmatprep.mubr.msk.f32.mxu0 %vm1162_vm6, %v55_v9 }
 0x2a9   :  { %938 = vbcast.lane.b32.xlu1 %v936_v8, 256  ;;  %v1559_v8 = vld [vmem:[%s2527_s8 + $0x8] sm:$0xff] }
 0x31b   :  { %v939_v53 = vpop.permute.xlu1 %938 }
 0x37a   :  { %v862_v13 = vpop.f32.mrb[16].mxu0 }
 0x37b   :  { %v2394_v14 = vmul.f32 0.35355338, %v862_v13  ;;  %v1942_v15 = vpop.f32.mrb[17].mxu0  ;;  %v989_v13 = vsub.s32 %v986_v11, %v2385_v61 }
 0x37d   :  { %v875_v16 = vrot.slane %v2394_v14, %v874_v12 }
 0x37f   :  { %v876_v17 = vcombine.high %v875_v16, %v875_v16  ;;  %v883_v18 = vrot.slane %v875_v16, %v874_v12 }
 0x381   :  { %v898_v19 = vrot.slane %v883_v18, %v897_v2  ;;  %v890_v20 = vrot.slane %v876_v17, %v874_v12  ;;  %v891_v21 = vcombine.high %v883_v18, %v883_v18 }
 0x383   :  { %v915_v22 = vsel %vm867_vm4, %v898_v19, -inf  ;;  %v902_v23 = vrot.slane %v890_v20, %v897_v2  ;;  %v906_v24 = vrot.slane %v891_v21, %v897_v2  ;;  %v892_v25 = vcombine.high %v890_v20, %v890_v20 }
 0x384   :  { %v920_v26 = vsel %vm919_vm5, %v915_v22, -inf }
 0x385   :  { %921 = vmax.xlane.f32.xlu0 %v920_v26  ;;  %v916_v27 = vsel %vm867_vm4, %v902_v23, -inf  ;;  %v917_v28 = vsel %vm867_vm4, %v906_v24, -inf  ;;  %v910_v29 = vrot.slane %v892_v25, %v897_v2  ;;  %v1558_v2 = vld [vmem:[%s2527_s8] sm:$0xff] }
 0x386   :  { %v923_v30 = vsel %vm919_vm5, %v916_v27, -inf  ;;  %v926_v31 = vsel %vm919_vm5, %v917_v28, -inf }
 0x387   :  { %924 = vmax.xlane.f32.xlu1 %v923_v30  ;;  %v918_v32 = vsel %vm867_vm4, %v910_v29, -inf }
 0x388   :  { %v929_v33 = vsel %vm919_vm5, %v918_v32, -inf }
 0x389   :  { %927 = vmax.xlane.f32.xlu0 %v926_v31 }
 0x38d   :  { %930 = vmax.xlane.f32.xlu0 %v929_v33 }
 0x398   :  { %952 = vbcast.lane.b32.xlu1 %v950_v37, 256 }
 0x39c   :  { %959 = vbcast.lane.b32.xlu1 %v957_v39, 256 }
 0x3a3   :  { %945 = vbcast.lane.b32.xlu0 %v943_v47, 256 }
 0x412   :  { %v922_v48 = vpop.xlane.xlu0 %921 }
 0x413   :  { %v965_v49 = vmax.f32 %v922_v48, %v939_v53 }
 0x414   :  { %v925_v50 = vpop.xlane.xlu1 %924 }
 0x415   :  { %974 = vperm.xlu0 %2080, %v965_v49  }
 0x416   :  { %v928_v51 = vpop.xlane.xlu0 %927 }
 0x418   :  { %v953_v54 = vpop.permute.xlu1 %952 }
 0x419   :  { %v967_v55 = vmax.f32 %v928_v51, %v953_v54 }
 0x41a   :  { %v931_v56 = vpop.xlane.xlu0 %930 }
 0x41b   :  { %980 = vperm.xlu0 %2080, %v967_v55  }
 0x41c   :  { %v960_v60 = vpop.permute.xlu1 %959 }
 0x41d   :  { %v968_v63 = vmax.f32 %v931_v56, %v960_v60 }
 0x41e   :  { %v946_v58 = vpop.permute.xlu0 %945 }
 0x41f   :  { %v966_v59 = vmax.f32 %v925_v50, %v946_v58  ;;  %360 = vperm.xlu0 %2080, %v334_v57  }
 0x421   :  { %977 = vperm.xlu1 %2081, %v966_v59  }
 0x423   :  { %370 = vperm.xlu0 %2080, %v336_v62  }
 0x425   :  { %983 = vperm.xlu1 %2081, %v968_v63  }
 0x427   :  { %1562 = vperm.xlu0 %2080, %v1558_v2  }
 0x429   :  { %365 = vperm.xlu1 %2081, %v335_v4  }
 0x42d   :  { %375 = vperm.xlu1 %2081, %v337_v6  }
 0x431   :  { %1567 = vperm.xlu1 %2081, %v1559_v8  }
 0x494   :  { %v975_v10 = vpop.permute.xlu0 %974 }
 0x495   :  { %v990_v18 = vrot.slane %v975_v10, %v989_v13 }
 0x49a   :  { %v981_v12 = vpop.permute.xlu0 %980 }
 0x49b   :  { %v998_v52 = vrot.slane %v981_v12, %v989_v13 }
 0x49e   :  { %v2440_v15 = vpop.permute.xlu0 %360 }
 0x49f   :  { %v489_v16 = vadd.f32 %v2358_v36, %v2440_v15  ;;  %v594_v54 = vadd.f32 %v2378_v44, %v2440_v15 }
 0x4a0   :  { %v978_v17 = vpop.permute.xlu1 %977 }
 0x4a1   :  { %v994_v19 = vrot.slane %v978_v17, %v989_v13 }
 0x4a2   :  { %v2444_v20 = vpop.permute.xlu0 %370 }
 0x4a3   :  { %v1004_v21 = vsel %vm1003_vm7, %v994_v19, %v990_v18  ;;  %v499_v22 = vadd.f32 %v2374_v42, %v2444_v20 }
 0x4a4   :  { %v984_v23 = vpop.permute.xlu1 %983  ;;  %v1006_v24 = vsel %vm1005_vm8, %v998_v52, %v1004_v21 }
 0x4a5   :  { %v1002_v61 = vrot.slane %v984_v23, %v989_v13 }
 0x4a7   :  { %v1008_v25 = vsel %vm1007_vm9, %v1002_v61, %v1006_v24  ;;  %v1557_v61 = vld [vmem:[%s2526_s7 + $0x8] sm:$0xff] }
 0x4a8   :  { %v1010_v26 = vsub.f32 %v2389_v5, %v1008_v25  ;;  %v366_v36 = vpop.permute.xlu1 %365  ;;  %1946 = vmatmul.mubr.msk.f32.vlgmr.msra.gmra.mrb[14].mxu1 %vm612_vm3, %v1008_v25  ;;  %v1563_v25 = vpop.permute.xlu0 %1562 }
 0x4a9   :  { %v494_v27 = vadd.f32 %v2354_v34, %v366_v36  ;;  %2054 = vmatpush3.bf16.msra.mxu1 %v2203_v3  ;;  %1956 = vmatprep.mubr.msk.f32.mxu1 %vm2120_vm2, %v2121_v1  ;;  %v56_v34 = vld [vmem:[%s2529_s10 + $0x8] sm:$0xff]  ;;  %v57_v1 = vld [vmem:[%s2529_s10 + $0x10] sm:$0xff]  ;;  %v599_v51 = vadd.f32 %v2376_v43, %v366_v36  ;;  %v604_v43 = vadd.f32 %v2382_v46, %v2444_v20 }
 0x4aa   :  { %v1011_v42 = vmul.f32 1.442695, %v1010_v26  ;;  %2055 = vmatprep.subr.bf16.mxu1 %v2119_v0  ;;  %v58_v0 = vld [vmem:[%s2529_s10 + $0x18] sm:$0xff] }
 0x4ac   :  { %2082 = vpow2.f32 %v1011_v42  ;;  %v376_v28 = vpop.permute.xlu1 %375 }
 0x4ad   :  { %v504_v29 = vadd.f32 %v2372_v41, %v376_v28  ;;  %2057 = vmatpush3.bf16.msra.mxu1 %v2211_v7 }
 0x4b6   :  { %v2083_v5 = vpop.eup %2082 }
 0x4b7   :  { %1959 = vmatprep.subr.msk.mxu0 %vm1175_vm10, %v2083_v5 }
 0x4b8   :  { %1960 = vmatpush3.msk.msra.mxu0 %vm1175_vm10, %v2083_v5 }
 0x4b9   :  { %1962 = vmatmul.mubr.msk.f32.vlgmr.msra.gmra.mrb[18].mxu0 %vm1162_vm6, %v56_v34 }
 0x4ba   :  { %1964 = vmatprep.mubr.msk.f32.mxu0 %vm1162_vm6, %v57_v1 }
 0x4bd   :  { %1965 = vmatmul.mubr.msk.f32.gmra.mrb[20].mxu0 %vm1162_vm6, %v58_v0 }
 0x4be   :  { %1977 = vmatprep.mubr.msk.f32.mxu0 %vm1162_vm6, %v55_v9 }
 0x57b   :  { %v1081_v41 = vpop.f32.mrb[14].mxu1 }
 0x57c   :  { %v1085_v30 = vsub.f32 %v2394_v14, %v1081_v41  ;;  %v1947_v31 = vpop.f32.mrb[15].mxu1 }
 0x57e   :  { %v1086_v32 = vmul.f32 1.442695, %v1085_v30 }
 0x580   :  { %2084 = vpow2.f32 %v1086_v32 }
 0x58a   :  { %v2085_v33 = vpop.eup %2084 }
 0x58b   :  { %1957 = vmatmul.mubr.msk.f32.vlgmr.msra.gmra.mrb[16].mxu1 %vm59_vm0, %v2085_v33  ;;  %1967 = vmatprep.subr.msk.mxu1 %vm1175_vm10, %v2085_v33 }
 0x58c   :  { %v1963_v35 = vpop.f32.mrb[18].mxu0  ;;  %1968 = vmatpush3.msk.msra.mxu1 %vm1175_vm10, %v2085_v33  ;;  %1969 = vmatprep.mubr.msk.f32.mxu1 %vm1162_vm6, %v55_v9 }
 0x58d   :  { %v1440_v37 = vmul.f32 %v1963_v35, %v494_v27  ;;  %v1245_v38 = vpop.f32.mrb[19].mxu0  ;;  %2059 = vmatprep.subr.bf16.mxu1 %v2203_v3  ;;  %v1568_v27 = vpop.permute.xlu1 %1567 }
 0x58e   :  { %v1439_v39 = vmul.f32 %v1245_v38, %v489_v16 }
 0x58f   :  { %1970 = vmatmul.mubr.msk.f32.vlgmr.msra.gmra.mrb[18].mxu1 %vm1162_vm6, %v56_v34 }
 0x590   :  { %v1966_v14 = vpop.f32.mrb[20].mxu0  ;;  %1972 = vmatprep.mubr.msk.f32.mxu1 %vm1162_vm6, %v57_v1  ;;  %2061 = vmatpush3.bf16.msra.mxu1 %v2203_v3 }
 0x591   :  { %v1442_v40 = vmul.f32 %v1966_v14, %v504_v29  ;;  %v1255_v47 = vpop.f32.mrb[21].mxu0  ;;  %2063 = vmatprep.subr.bf16.mxu1 %v2211_v7 }
 0x592   :  { %v1441_v53 = vmul.f32 %v1255_v47, %v499_v22 }
 0x593   :  { %1973 = vmatmul.mubr.msk.f32.gmra.mrb[20].mxu1 %vm1162_vm6, %v58_v0 }
 0x594   :  { %2065 = vmatpush3.bf16.msra.mxu1 %v2211_v7  ;;  %v609_v7 = vadd.f32 %v2380_v45, %v376_v28  ;;  %v1556_v45 = vld [vmem:[%s2526_s7] sm:$0xff] }
 0x65e   :  { %v1157_v48 = vpop.f32.mrb[16].mxu1 }
 0x65f   :  { %v1161_v49 = vadd.f32 %v2083_v5, %v1157_v48  ;;  %v1958_v50 = vpop.f32.mrb[17].mxu1 }
 0x661   :  { %1975 = vmatprep.subr.msk.mxu0 %vm1175_vm10, %v1161_v49 }
 0x662   :  { %v1971_v3 = vpop.f32.mrb[18].mxu1  ;;  %1976 = vmatpush3.msk.msra.mxu0 %vm1175_vm10, %v1161_v49 }
 0x663   :  { %v1444_v55 = vmul.f32 %v1971_v3, %v599_v51  ;;  %v1332_v56 = vpop.f32.mrb[19].mxu1  ;;  %1978 = vmatmul.mubr.msk.f32.vlgmr.msra.gmra.mrb[22].mxu0 %vm1162_vm6, %v56_v34 }
 0x664   :  { %v1443_v57 = vmul.f32 %v1332_v56, %v594_v54  ;;  %1980 = vmatprep.mubr.msk.f32.mxu0 %vm1162_vm6, %v57_v1 }
 0x666   :  { %v1974_v58 = vpop.f32.mrb[20].mxu1  ;;  %1991 = vmatprep.mubr.msk.f32.mxu1 %vm59_vm0, %v1443_v57 }
 0x667   :  { %v1446_v59 = vmul.f32 %v1974_v58, %v609_v7  ;;  %v1342_v44 = vpop.f32.mrb[21].mxu1  ;;  %1981 = vmatmul.mubr.msk.f32.gmra.mrb[24].mxu0 %vm1162_vm6, %v58_v0  ;;  %1992 = vmatmul.mubr.msk.f32.vlgmr.msra.gmra.mrb[22].mxu1 %vm59_vm0, %v1444_v55 }
 0x668   :  { %v1445_v60 = vmul.f32 %v1342_v44, %v604_v43  ;;  %2005 = vmatprep.mubr.msk.f32.mxu0 %vm59_vm0, %v1556_v45 }
 0x66a   :  { %1994 = vmatprep.mubr.msk.f32.mxu1 %vm59_vm0, %v1445_v60 }
 0x66b   :  { %1995 = vmatmul.mubr.msk.f32.gmra.mrb[24].mxu1 %vm59_vm0, %v1446_v59 }
 0x736   :  { %v1979_v46 = vpop.f32.mrb[22].mxu0 }
 0x737   :  { %2086 = vrcp.f32 %v1979_v46  ;;  %v1420_v62 = vpop.f32.mrb[23].mxu0 }
 0x738   :  { %2088 = vrcp.f32 %v1420_v62 }
 0x73a   :  { %v1982_v63 = vpop.f32.mrb[24].mxu0  ;;  %v1993_v2 = vpop.f32.mrb[22].mxu1 }
 0x73b   :  { %2090 = vrcp.f32 %v1982_v63  ;;  %v1545_v4 = vadd.f32 %v1993_v2, %v1440_v37  ;;  %v1430_v6 = vpop.f32.mrb[25].mxu0  ;;  %v1525_v8 = vpop.f32.mrb[23].mxu1 }
 0x73c   :  { %2092 = vrcp.f32 %v1430_v6  ;;  %v1544_v9 = vadd.f32 %v1525_v8, %v1439_v39 }
 0x73e   :  { %v1996_v10 = vpop.f32.mrb[24].mxu1 }
 0x73f   :  { %v1547_v11 = vadd.f32 %v1996_v10, %v1442_v40  ;;  %v1535_v12 = vpop.f32.mrb[25].mxu1 }
 0x740   :  { %v1546_v13 = vadd.f32 %v1535_v12, %v1441_v53 }
 0x741   :  { %v2087_v15 = vpop.eup %2086 }
 0x742   :  { %v2089_v16 = vpop.eup %2088  ;;  %v1553_v17 = vmul.f32 %v2087_v15, %v1545_v4 }
 0x743   :  { %v1552_v18 = vmul.f32 %v2089_v16, %v1544_v9 }
 0x745   :  { %v2091_v19 = vpop.eup %2090  ;;  %v2066_v20 = vpack.c.bf16 %v1553_v17, %v1552_v18 }
 0x746   :  { %v2093_v21 = vpop.eup %2092  ;;  %v1555_v22 = vmul.f32 %v2091_v19, %v1547_v11 }
 0x747   :  { %v1554_v52 = vmul.f32 %v2093_v21, %v1546_v13  ;;  %2067 = vmatprep.subr.bf16.mxu0 %v2066_v20 }
 0x748   :  { %2069 = vmatpush3.bf16.msra.mxu0 %v2066_v20 }
 0x749   :  { %v2070_v23 = vpack.c.bf16 %v1555_v22, %v1554_v52 }
 0x74b   :  { %2071 = vmatprep.subr.bf16.mxu0 %v2070_v23 }
 0x74c   :  { %2073 = vmatpush3.bf16.msra.mxu0 %v2070_v23 }
 0x74f   :  { %2006 = vmatmul.mubr.msk.f32.vlgmr.msra.gmra.mrb[26].mxu0 %vm59_vm0, %v1557_v61 }
 0x822   :  { %v2007_v24 = vpop.f32.mrb[26].mxu0 }
 0x823   :  { %v1642_v26 = vpop.f32.mrb[27].mxu0  ;;  %v1648_v42 = vadd.f32 %v2007_v24, %v1568_v27 }
 0x824   :  { %v1643_v36 = vadd.f32 %v1642_v26, %v1563_v25 }
 0x826   :  { %1651 = vxpose.xlu0.b32.start [1/2] (short) (narrow) %v1643_v36, 8 }
 0x82a   :  { %1652 = vxpose.xlu0.b32.end [2/2] (short) (narrow) %v1648_v42, 8 }
 0x8a6   :  { %v1667_v28 = vpop.trf.xlu0 }
 0x8a7   :  { %1684 = vst.msk [vmem:[#allocation2] sm:$0x3] %vm1683_vm11, %v1667_v28 }
 0x8a8   :  { %2105 = shalt.err (!%p2102_p4)
}
 0x8a9   :  { %s2106_s19 = scalar_lea.hbm %s2532_s13, 32 }
 0x8aa   :  { %p2107_p5 = scmp.ne.s32.totalorder %s2532_s13, %s2106_s19  ;;  %p2110_p6 = scmp.lt.u32.totalorder %s2106_s19, %s2532_s13 }
 0x8ac   :  { %p2112_p7 = pnand %p2110_p6, %p2107_p5 }
 0x8ae   :  { %2115 = shalt.err (!%p2112_p7)
}
 0x8af   :  { %1694 = dma.vmem_to_hbm [thread:$0]  %s1692_s17, 32, %s2532_s13, [#allocation3]  }
 0x8b0   :  { %2116 = dma.done.wait [#allocation3], 32  }
 0x8b1   :  { %2117 = vsyncadd [#allocation3], 4294967264 }
 0x8b2   :  { %1698 = vsyncpa [#allocation3], 1 }

</bundles_post_ra>
